<compile_context>
chip_gen: v7x
topology: tpu7x:2x2x1
jax: 0.10.0
libtpu: 0.0.40
codegen_flags: <defaults>
</compile_context>

<pallas_src>
import functools

import numpy as np
import jax
import jax.numpy as jnp
from jax.experimental import pallas as pl
from jax.experimental.pallas import tpu as pltpu

EPS = 1e-5  # torch.nn.InstanceNorm2d default eps


# --------------------------------- kernel ------------------------------------

def _rb_kernel(x_ref, mask_ref, w1_ref, b1_ref, g1_ref, be1_ref, alpha_ref,
               w2_ref, b2_ref, g2_ref, be2_ref, o_ref, *, H, W, R):
    HW = H * W

    # Hoisted edge-mask broadcasts (each reused by both convs).
    m = mask_ref[...]                                # (4, HW) f32, host-precomputed
    m_l = jnp.broadcast_to(m[0:1, :], (R, HW))       # 0 where column == 0
    m_r = jnp.broadcast_to(m[1:2, :], (R, HW))       # 0 where column == W-1
    m_t = jnp.broadcast_to(m[2:3, :], (R, HW))       # 0 where row == 0
    m_b = jnp.broadcast_to(m[3:4, :], (R, HW))       # 0 where row == H-1

    def conv3x3(v, w_ref_, bias):
        # v: (R, HW) f32, rows = (image, channel) pairs.
        # w_ref_[k]: (R, R) block-diagonal per-image weights, tap k = dy*3 + dx.
        # Column taps: in-register lane rolls (XLU) + column masks (kills row wrap).
        u = (pltpu.roll(v, 1, axis=1) * m_l,         # input column x-1
             v,                                      # input column x
             pltpu.roll(v, HW - 1, axis=1) * m_r)    # input column x+1
        # Channel mix per kernel row dy: 3 tiny MXU dots, summed as a tree
        # (no long serial VALU accumulation chain).
        g = []
        for dy in range(3):
            p0 = jnp.dot(w_ref_[dy * 3 + 0], u[0], preferred_element_type=jnp.float32)
            p1 = jnp.dot(w_ref_[dy * 3 + 1], u[1], preferred_element_type=jnp.float32)
            p2 = jnp.dot(w_ref_[dy * 3 + 2], u[2], preferred_element_type=jnp.float32)
            g.append((p0 + p1) + p2)
        # Row shift commutes with the channel contraction -> roll the mixed result
        # of each dy group once and mask the vertically out-of-bounds rows.
        y = g[1] + bias
        y = y + m_t * pltpu.roll(g[0], W, axis=1)         # contribution of row y-1
        y = y + m_b * pltpu.roll(g[2], HW - W, axis=1)    # contribution of row y+1
        return y

    def inorm(y, gamma, beta):
        # InstanceNorm2d (affine, biased variance), two-pass form for stability.
        inv = 1.0 / HW
        mean = jnp.sum(y, axis=1, keepdims=True) * inv
        d = y - mean
        var = jnp.sum(d * d, axis=1, keepdims=True) * inv
        return d * (jax.lax.rsqrt(var + EPS) * gamma) + beta

    x = x_ref[0]                                      # (R, HW) f32

    y = conv3x3(x, w1_ref, b1_ref[...])
    y = inorm(y, g1_ref[...], be1_ref[...])
    alpha = alpha_ref[0]                              # shared PReLU alpha (SMEM scalar)
    y = jnp.where(y >= 0.0, y, alpha * y)

    y = conv3x3(y, w2_ref, b2_ref[...])
    y = inorm(y, g2_ref[...], be2_ref[...])

    o_ref[0] = (y + x).astype(o_ref.dtype)            # residual add


# --------------------------------- wrapper -----------------------------------

def _pick_images_per_block(N, C):
    """Images folded into one block: fill the 8 f32 sublanes (B*C % 8 == 0) with the
    smallest such B so the grid keeps as many steps as possible (>= 2 grid steps
    feeds both v7x TensorCores when N allows)."""
    want = max(1, 8 // max(C, 1))
    for b in range(min(want, N), 0, -1):
        if N % b == 0:
            return b
    return 1


def _pack_w(w, B, C):
    # w: (3, 3, Cin, Cout) -> (9, B*C, B*C) per-tap block-diagonal weights
    # (row = b*C + cout, col = b*C + cin), i.e. kron(I_B, W_k^T) per tap.
    wk = jnp.transpose(w.reshape(9, C, C), (0, 2, 1))       # (9, cout, cin)
    eye = jnp.eye(B, dtype=w.dtype)
    return jnp.einsum("ab,koi->kaobi", eye, wk).reshape(9, B * C, B * C)


def rb_forward(x_nchw, params):
    """RB forward. x_nchw: (N, C, H, W) float32 -> (N, C, H, W) float32."""
    N, C, H, W = x_nchw.shape
    HW = H * W
    B = _pick_images_per_block(N, C)
    G = N // B
    R = B * C

    x = x_nchw.reshape(G, R, HW)                      # free row-major reshapes

    def vec(p):                                       # per-channel -> per-row column
        return jnp.tile(p, B).reshape(R, 1)

    w1 = _pack_w(params["w1"], B, C)
    w2 = _pack_w(params["w2"], B, C)

    # Edge masks (compile-time constants, built on host with numpy).
    idx = np.arange(HW)
    col = idx % W
    row = idx // W
    masks = jnp.asarray(np.stack([col != 0, col != W - 1,
                                  row != 0, row != H - 1]).astype(np.float32))  # (4, HW)

    act_spec = pl.BlockSpec((1, R, HW), lambda g: (g, 0, 0))
    mask_spec = pl.BlockSpec((4, HW), lambda g: (0, 0))
    w_spec = pl.BlockSpec((9, R, R), lambda g: (0, 0, 0))
    vec_spec = pl.BlockSpec((R, 1), lambda g: (0, 0))
    smem_spec = pl.BlockSpec(memory_space=pltpu.MemorySpace.SMEM)

    out = pl.pallas_call(
        functools.partial(_rb_kernel, H=H, W=W, R=R),
        out_shape=jax.ShapeDtypeStruct((G, R, HW), jnp.float32),
        grid=(G,),
        in_specs=[act_spec, mask_spec,
                  w_spec, vec_spec, vec_spec, vec_spec, smem_spec,
                  w_spec, vec_spec, vec_spec, vec_spec],
        out_specs=act_spec,
        compiler_params=pltpu.CompilerParams(
            dimension_semantics=("parallel",)),
    )(x, masks,
      w1, vec(params["b1"]), vec(params["g1"]), vec(params["be1"]),
      params["alpha"],
      w2, vec(params["b2"]), vec(params["g2"]), vec(params["be2"]))

    return out.reshape(N, C, H, W)


# ------------------------------ reference (JAX) -------------------------------

def rb_reference(x, p):
    def conv(v, w, b):
        y = jax.lax.conv_general_dilated(
            v, w, window_strides=(1, 1), padding="SAME",
            dimension_numbers=("NCHW", "HWIO", "NCHW"))
        return y + b.reshape(1, -1, 1, 1)

    def inorm(y, g, be):
        m = jnp.mean(y, axis=(2, 3), keepdims=True)
        v = jnp.mean((y - m) ** 2, axis=(2, 3), keepdims=True)
        return ((y - m) * jax.lax.rsqrt(v + EPS) * g.reshape(1, -1, 1, 1)
                + be.reshape(1, -1, 1, 1))

    y = inorm(conv(x, p["w1"], p["b1"]), p["g1"], p["be1"])
    a = p["alpha"][0]
    y = jnp.where(y >= 0.0, y, a * y)
    y = inorm(conv(y, p["w2"], p["b2"]), p["g2"], p["be2"])
    return y + x


# ----------------------------------- main -------------------------------------

if __name__ == "__main__":
    N, C, H, W = 4, 4, 16, 16     # n_feats = 4; N=4 -> 2 images/block, 2 grid steps
    key = jax.random.PRNGKey(0)
    ks = jax.random.split(key, 9)

    params = {
        "w1": 0.1 * jax.random.normal(ks[0], (3, 3, C, C), jnp.float32),
        "b1": 0.1 * jax.random.normal(ks[1], (C,), jnp.float32),
        "g1": 1.0 + 0.1 * jax.random.normal(ks[2], (C,), jnp.float32),
        "be1": 0.1 * jax.random.normal(ks[3], (C,), jnp.float32),
        "alpha": jnp.full((1,), 0.25, jnp.float32),      # PReLU default init
        "w2": 0.1 * jax.random.normal(ks[4], (3, 3, C, C), jnp.float32),
        "b2": 0.1 * jax.random.normal(ks[5], (C,), jnp.float32),
        "g2": 1.0 + 0.1 * jax.random.normal(ks[6], (C,), jnp.float32),
        "be2": 0.1 * jax.random.normal(ks[7], (C,), jnp.float32),
    }

    x = jax.random.normal(ks[8], (N, C, H, W), jnp.float32)

    out = jax.block_until_ready(rb_forward(x, params))
    ref = jax.block_until_ready(rb_reference(x, params))

    assert out.shape == (N, C, H, W)
    assert jnp.allclose(out, ref, rtol=1e-4, atol=1e-4), "Pallas RB mismatch vs reference"
    print("KERNEL_OK")
</pallas_src>

<mosaic_0001>
module attributes {stable_mosaic.version = 11 : i64} {
  func.func @_rb_kernel(%arg0: i32, %arg1: memref<1x8x256xf32, #tpu.memory_space<vmem>>, %arg2: memref<4x256xf32, #tpu.memory_space<vmem>>, %arg3: memref<9x8x8xf32, #tpu.memory_space<vmem>>, %arg4: memref<8x1xf32, #tpu.memory_space<vmem>>, %arg5: memref<8x1xf32, #tpu.memory_space<vmem>>, %arg6: memref<8x1xf32, #tpu.memory_space<vmem>>, %arg7: memref<1xf32, #tpu.memory_space<smem>>, %arg8: memref<9x8x8xf32, #tpu.memory_space<vmem>>, %arg9: memref<8x1xf32, #tpu.memory_space<vmem>>, %arg10: memref<8x1xf32, #tpu.memory_space<vmem>>, %arg11: memref<8x1xf32, #tpu.memory_space<vmem>>, %arg12: memref<1x8x256xf32, #tpu.memory_space<vmem>>) attributes {dimension_semantics = [#tpu.dimension_semantics<parallel>], iteration_bounds = array<i64: 2>, scalar_prefetch = 0 : i64, scratch_operands = 0 : i64, tpu.core_type = #tpu.core_type<tc>, window_params = [{transform_indices = @transform_0, window_bounds = array<i64: 1, 8, 256>}, {pipeline_mode = #tpu.pipeline_mode<synchronous>, transform_indices = @transform_1, window_bounds = array<i64: 4, 256>}, {pipeline_mode = #tpu.pipeline_mode<synchronous>, transform_indices = @transform_2, window_bounds = array<i64: 9, 8, 8>}, {pipeline_mode = #tpu.pipeline_mode<synchronous>, transform_indices = @transform_3, window_bounds = array<i64: 8, 1>}, {pipeline_mode = #tpu.pipeline_mode<synchronous>, transform_indices = @transform_4, window_bounds = array<i64: 8, 1>}, {pipeline_mode = #tpu.pipeline_mode<synchronous>, transform_indices = @transform_5, window_bounds = array<i64: 8, 1>}, {transform_indices = @transform_6, window_bounds = array<i64: 1>}, {pipeline_mode = #tpu.pipeline_mode<synchronous>, transform_indices = @transform_7, window_bounds = array<i64: 9, 8, 8>}, {pipeline_mode = #tpu.pipeline_mode<synchronous>, transform_indices = @transform_8, window_bounds = array<i64: 8, 1>}, {pipeline_mode = #tpu.pipeline_mode<synchronous>, transform_indices = @transform_9, window_bounds = array<i64: 8, 1>}, {pipeline_mode = #tpu.pipeline_mode<synchronous>, transform_indices = @transform_10, window_bounds = array<i64: 8, 1>}, {transform_indices = @transform_11, window_bounds = array<i64: 1, 8, 256>}]} {
    %c0 = arith.constant 0 : index
    %c0_0 = arith.constant 0 : index
    %0 = vector.load %arg2[%c0, %c0_0] : memref<4x256xf32, #tpu.memory_space<vmem>>, vector<4x256xf32>
    %1 = vector.extract_strided_slice %0 {offsets = [0, 0], sizes = [1, 256], strides = [1, 1]} : vector<4x256xf32> to vector<1x256xf32>
    %2 = vector.shape_cast %1 : vector<1x256xf32> to vector<1x256xf32>
    %3 = vector.broadcast %2 : vector<1x256xf32> to vector<8x256xf32>
    %4 = vector.extract_strided_slice %0 {offsets = [1, 0], sizes = [1, 256], strides = [1, 1]} : vector<4x256xf32> to vector<1x256xf32>
    %5 = vector.shape_cast %4 : vector<1x256xf32> to vector<1x256xf32>
    %6 = vector.broadcast %5 : vector<1x256xf32> to vector<8x256xf32>
    %7 = vector.extract_strided_slice %0 {offsets = [2, 0], sizes = [1, 256], strides = [1, 1]} : vector<4x256xf32> to vector<1x256xf32>
    %8 = vector.shape_cast %7 : vector<1x256xf32> to vector<1x256xf32>
    %9 = vector.broadcast %8 : vector<1x256xf32> to vector<8x256xf32>
    %10 = vector.extract_strided_slice %0 {offsets = [3, 0], sizes = [1, 256], strides = [1, 1]} : vector<4x256xf32> to vector<1x256xf32>
    %11 = vector.shape_cast %10 : vector<1x256xf32> to vector<1x256xf32>
    %12 = vector.broadcast %11 : vector<1x256xf32> to vector<8x256xf32>
    %c0_1 = arith.constant 0 : index
    %c0_2 = arith.constant 0 : index
    %c0_3 = arith.constant 0 : index
    %13 = vector.load %arg1[%c0_1, %c0_2, %c0_3] : memref<1x8x256xf32, #tpu.memory_space<vmem>>, vector<1x8x256xf32>
    %14 = vector.shape_cast %13 : vector<1x8x256xf32> to vector<8x256xf32>
    %c0_4 = arith.constant 0 : index
    %c0_5 = arith.constant 0 : index
    %15 = vector.load %arg4[%c0_4, %c0_5] : memref<8x1xf32, #tpu.memory_space<vmem>>, vector<8x1xf32>
    %c1_i32 = arith.constant 1 : i32
    %16 = tpu.dynamic_rotate %14 by %c1_i32 dim 1 : vector<8x256xf32>, i32 -> vector<8x256xf32>
    %17 = arith.mulf %16, %3 : vector<8x256xf32>
    %c255_i32 = arith.constant 255 : i32
    %18 = tpu.dynamic_rotate %14 by %c255_i32 dim 1 : vector<8x256xf32>, i32 -> vector<8x256xf32>
    %19 = arith.mulf %18, %6 : vector<8x256xf32>
    %c0_6 = arith.constant 0 : index
    %c0_7 = arith.constant 0 : index
    %c0_8 = arith.constant 0 : index
    %20 = vector.load %arg3[%c0_6, %c0_7, %c0_8] : memref<9x8x8xf32, #tpu.memory_space<vmem>>, vector<1x8x8xf32>
    %21 = vector.shape_cast %20 : vector<1x8x8xf32> to vector<8x8xf32>
    %cst = arith.constant dense<0.000000e+00> : vector<8x256xf32>
    %22 = tpu.matmul %21, %17, %cst {dimension_numbers = #tpu.dot_dimension_numbers<[1], [0], [0], [1], [0, 0, 1, 1], [], []>} : vector<8x8xf32>, vector<8x256xf32>, vector<8x256xf32> -> vector<8x256xf32>
    %c1 = arith.constant 1 : index
    %c0_9 = arith.constant 0 : index
    %c0_10 = arith.constant 0 : index
    %23 = vector.load %arg3[%c1, %c0_9, %c0_10] : memref<9x8x8xf32, #tpu.memory_space<vmem>>, vector<1x8x8xf32>
    %24 = vector.shape_cast %23 : vector<1x8x8xf32> to vector<8x8xf32>
    %cst_11 = arith.constant dense<0.000000e+00> : vector<8x256xf32>
    %25 = tpu.matmul %24, %14, %cst_11 {dimension_numbers = #tpu.dot_dimension_numbers<[1], [0], [0], [1], [0, 0, 1, 1], [], []>} : vector<8x8xf32>, vector<8x256xf32>, vector<8x256xf32> -> vector<8x256xf32>
    %c2 = arith.constant 2 : index
    %c0_12 = arith.constant 0 : index
    %c0_13 = arith.constant 0 : index
    %26 = vector.load %arg3[%c2, %c0_12, %c0_13] : memref<9x8x8xf32, #tpu.memory_space<vmem>>, vector<1x8x8xf32>
    %27 = vector.shape_cast %26 : vector<1x8x8xf32> to vector<8x8xf32>
    %cst_14 = arith.constant dense<0.000000e+00> : vector<8x256xf32>
    %28 = tpu.matmul %27, %19, %cst_14 {dimension_numbers = #tpu.dot_dimension_numbers<[1], [0], [0], [1], [0, 0, 1, 1], [], []>} : vector<8x8xf32>, vector<8x256xf32>, vector<8x256xf32> -> vector<8x256xf32>
    %29 = arith.addf %22, %25 : vector<8x256xf32>
    %30 = arith.addf %29, %28 : vector<8x256xf32>
    %c3 = arith.constant 3 : index
    %c0_15 = arith.constant 0 : index
    %c0_16 = arith.constant 0 : index
    %31 = vector.load %arg3[%c3, %c0_15, %c0_16] : memref<9x8x8xf32, #tpu.memory_space<vmem>>, vector<1x8x8xf32>
    %32 = vector.shape_cast %31 : vector<1x8x8xf32> to vector<8x8xf32>
    %cst_17 = arith.constant dense<0.000000e+00> : vector<8x256xf32>
    %33 = tpu.matmul %32, %17, %cst_17 {dimension_numbers = #tpu.dot_dimension_numbers<[1], [0], [0], [1], [0, 0, 1, 1], [], []>} : vector<8x8xf32>, vector<8x256xf32>, vector<8x256xf32> -> vector<8x256xf32>
    %c4 = arith.constant 4 : index
    %c0_18 = arith.constant 0 : index
    %c0_19 = arith.constant 0 : index
    %34 = vector.load %arg3[%c4, %c0_18, %c0_19] : memref<9x8x8xf32, #tpu.memory_space<vmem>>, vector<1x8x8xf32>
    %35 = vector.shape_cast %34 : vector<1x8x8xf32> to vector<8x8xf32>
    %cst_20 = arith.constant dense<0.000000e+00> : vector<8x256xf32>
    %36 = tpu.matmul %35, %14, %cst_20 {dimension_numbers = #tpu.dot_dimension_numbers<[1], [0], [0], [1], [0, 0, 1, 1], [], []>} : vector<8x8xf32>, vector<8x256xf32>, vector<8x256xf32> -> vector<8x256xf32>
    %c5 = arith.constant 5 : index
    %c0_21 = arith.constant 0 : index
    %c0_22 = arith.constant 0 : index
    %37 = vector.load %arg3[%c5, %c0_21, %c0_22] : memref<9x8x8xf32, #tpu.memory_space<vmem>>, vector<1x8x8xf32>
    %38 = vector.shape_cast %37 : vector<1x8x8xf32> to vector<8x8xf32>
    %cst_23 = arith.constant dense<0.000000e+00> : vector<8x256xf32>
    %39 = tpu.matmul %38, %19, %cst_23 {dimension_numbers = #tpu.dot_dimension_numbers<[1], [0], [0], [1], [0, 0, 1, 1], [], []>} : vector<8x8xf32>, vector<8x256xf32>, vector<8x256xf32> -> vector<8x256xf32>
    %40 = arith.addf %33, %36 : vector<8x256xf32>
    %41 = arith.addf %40, %39 : vector<8x256xf32>
    %c6 = arith.constant 6 : index
    %c0_24 = arith.constant 0 : index
    %c0_25 = arith.constant 0 : index
    %42 = vector.load %arg3[%c6, %c0_24, %c0_25] : memref<9x8x8xf32, #tpu.memory_space<vmem>>, vector<1x8x8xf32>
    %43 = vector.shape_cast %42 : vector<1x8x8xf32> to vector<8x8xf32>
    %cst_26 = arith.constant dense<0.000000e+00> : vector<8x256xf32>
    %44 = tpu.matmul %43, %17, %cst_26 {dimension_numbers = #tpu.dot_dimension_numbers<[1], [0], [0], [1], [0, 0, 1, 1], [], []>} : vector<8x8xf32>, vector<8x256xf32>, vector<8x256xf32> -> vector<8x256xf32>
    %c7 = arith.constant 7 : index
    %c0_27 = arith.constant 0 : index
    %c0_28 = arith.constant 0 : index
    %45 = vector.load %arg3[%c7, %c0_27, %c0_28] : memref<9x8x8xf32, #tpu.memory_space<vmem>>, vector<1x8x8xf32>
    %46 = vector.shape_cast %45 : vector<1x8x8xf32> to vector<8x8xf32>
    %cst_29 = arith.constant dense<0.000000e+00> : vector<8x256xf32>
    %47 = tpu.matmul %46, %14, %cst_29 {dimension_numbers = #tpu.dot_dimension_numbers<[1], [0], [0], [1], [0, 0, 1, 1], [], []>} : vector<8x8xf32>, vector<8x256xf32>, vector<8x256xf32> -> vector<8x256xf32>
    %c8 = arith.constant 8 : index
    %c0_30 = arith.constant 0 : index
    %c0_31 = arith.constant 0 : index
    %48 = vector.load %arg3[%c8, %c0_30, %c0_31] : memref<9x8x8xf32, #tpu.memory_space<vmem>>, vector<1x8x8xf32>
    %49 = vector.shape_cast %48 : vector<1x8x8xf32> to vector<8x8xf32>
    %cst_32 = arith.constant dense<0.000000e+00> : vector<8x256xf32>
    %50 = tpu.matmul %49, %19, %cst_32 {dimension_numbers = #tpu.dot_dimension_numbers<[1], [0], [0], [1], [0, 0, 1, 1], [], []>} : vector<8x8xf32>, vector<8x256xf32>, vector<8x256xf32> -> vector<8x256xf32>
    %51 = arith.addf %44, %47 : vector<8x256xf32>
    %52 = arith.addf %51, %50 : vector<8x256xf32>
    %53 = vector.broadcast %15 : vector<8x1xf32> to vector<8x256xf32>
    %54 = arith.addf %41, %53 : vector<8x256xf32>
    %c16_i32 = arith.constant 16 : i32
    %55 = tpu.dynamic_rotate %30 by %c16_i32 dim 1 : vector<8x256xf32>, i32 -> vector<8x256xf32>
    %56 = arith.mulf %9, %55 : vector<8x256xf32>
    %57 = arith.addf %54, %56 : vector<8x256xf32>
    %c240_i32 = arith.constant 240 : i32
    %58 = tpu.dynamic_rotate %52 by %c240_i32 dim 1 : vector<8x256xf32>, i32 -> vector<8x256xf32>
    %59 = arith.mulf %12, %58 : vector<8x256xf32>
    %60 = arith.addf %57, %59 : vector<8x256xf32>
    %c0_33 = arith.constant 0 : index
    %c0_34 = arith.constant 0 : index
    %61 = vector.load %arg5[%c0_33, %c0_34] : memref<8x1xf32, #tpu.memory_space<vmem>>, vector<8x1xf32>
    %c0_35 = arith.constant 0 : index
    %c0_36 = arith.constant 0 : index
    %62 = vector.load %arg6[%c0_35, %c0_36] : memref<8x1xf32, #tpu.memory_space<vmem>>, vector<8x1xf32>
    %cst_37 = arith.constant dense<0.000000e+00> : vector<8xf32>
    %63 = vector.multi_reduction <add>, %60, %cst_37 [1] : vector<8x256xf32> to vector<8xf32>
    %64 = vector.shape_cast %63 : vector<8xf32> to vector<8x1xf32>
    %cst_38 = arith.constant 3.906250e-03 : f32
    %65 = vector.broadcast %cst_38 : f32 to vector<8x1xf32>
    %66 = arith.mulf %64, %65 : vector<8x1xf32>
    %67 = vector.broadcast %66 : vector<8x1xf32> to vector<8x256xf32>
    %68 = arith.subf %60, %67 : vector<8x256xf32>
    %69 = arith.mulf %68, %68 : vector<8x256xf32>
    %cst_39 = arith.constant dense<0.000000e+00> : vector<8xf32>
    %70 = vector.multi_reduction <add>, %69, %cst_39 [1] : vector<8x256xf32> to vector<8xf32>
    %71 = vector.shape_cast %70 : vector<8xf32> to vector<8x1xf32>
    %cst_40 = arith.constant 3.906250e-03 : f32
    %72 = vector.broadcast %cst_40 : f32 to vector<8x1xf32>
    %73 = arith.mulf %71, %72 : vector<8x1xf32>
    %cst_41 = arith.constant 9.99999974E-6 : f32
    %74 = vector.broadcast %cst_41 : f32 to vector<8x1xf32>
    %75 = arith.addf %73, %74 : vector<8x1xf32>
    %76 = math.rsqrt %75 : vector<8x1xf32>
    %77 = arith.mulf %76, %61 : vector<8x1xf32>
    %78 = vector.broadcast %77 : vector<8x1xf32> to vector<8x256xf32>
    %79 = arith.mulf %68, %78 : vector<8x256xf32>
    %80 = vector.broadcast %62 : vector<8x1xf32> to vector<8x256xf32>
    %81 = arith.addf %79, %80 : vector<8x256xf32>
    %c0_42 = arith.constant 0 : index
    %82 = memref.load %arg7[%c0_42] : memref<1xf32, #tpu.memory_space<smem>>
    %cst_43 = arith.constant 0.000000e+00 : f32
    %83 = vector.broadcast %cst_43 : f32 to vector<8x256xf32>
    %84 = arith.cmpf oge, %81, %83 : vector<8x256xf32>
    %85 = vector.broadcast %82 : f32 to vector<8x256xf32>
    %86 = arith.mulf %85, %81 : vector<8x256xf32>
    %87 = arith.select %84, %81, %86 : vector<8x256xi1>, vector<8x256xf32>
    %c0_44 = arith.constant 0 : index
    %c0_45 = arith.constant 0 : index
    %88 = vector.load %arg9[%c0_44, %c0_45] : memref<8x1xf32, #tpu.memory_space<vmem>>, vector<8x1xf32>
    %c1_i32_46 = arith.constant 1 : i32
    %89 = tpu.dynamic_rotate %87 by %c1_i32_46 dim 1 : vector<8x256xf32>, i32 -> vector<8x256xf32>
    %90 = arith.mulf %89, %3 : vector<8x256xf32>
    %c255_i32_47 = arith.constant 255 : i32
    %91 = tpu.dynamic_rotate %87 by %c255_i32_47 dim 1 : vector<8x256xf32>, i32 -> vector<8x256xf32>
    %92 = arith.mulf %91, %6 : vector<8x256xf32>
    %c0_48 = arith.constant 0 : index
    %c0_49 = arith.constant 0 : index
    %c0_50 = arith.constant 0 : index
    %93 = vector.load %arg8[%c0_48, %c0_49, %c0_50] : memref<9x8x8xf32, #tpu.memory_space<vmem>>, vector<1x8x8xf32>
    %94 = vector.shape_cast %93 : vector<1x8x8xf32> to vector<8x8xf32>
    %cst_51 = arith.constant dense<0.000000e+00> : vector<8x256xf32>
    %95 = tpu.matmul %94, %90, %cst_51 {dimension_numbers = #tpu.dot_dimension_numbers<[1], [0], [0], [1], [0, 0, 1, 1], [], []>} : vector<8x8xf32>, vector<8x256xf32>, vector<8x256xf32> -> vector<8x256xf32>
    %c1_52 = arith.constant 1 : index
    %c0_53 = arith.constant 0 : index
    %c0_54 = arith.constant 0 : index
    %96 = vector.load %arg8[%c1_52, %c0_53, %c0_54] : memref<9x8x8xf32, #tpu.memory_space<vmem>>, vector<1x8x8xf32>
    %97 = vector.shape_cast %96 : vector<1x8x8xf32> to vector<8x8xf32>
    %cst_55 = arith.constant dense<0.000000e+00> : vector<8x256xf32>
    %98 = tpu.matmul %97, %87, %cst_55 {dimension_numbers = #tpu.dot_dimension_numbers<[1], [0], [0], [1], [0, 0, 1, 1], [], []>} : vector<8x8xf32>, vector<8x256xf32>, vector<8x256xf32> -> vector<8x256xf32>
    %c2_56 = arith.constant 2 : index
    %c0_57 = arith.constant 0 : index
    %c0_58 = arith.constant 0 : index
    %99 = vector.load %arg8[%c2_56, %c0_57, %c0_58] : memref<9x8x8xf32, #tpu.memory_space<vmem>>, vector<1x8x8xf32>
    %100 = vector.shape_cast %99 : vector<1x8x8xf32> to vector<8x8xf32>
    %cst_59 = arith.constant dense<0.000000e+00> : vector<8x256xf32>
    %101 = tpu.matmul %100, %92, %cst_59 {dimension_numbers = #tpu.dot_dimension_numbers<[1], [0], [0], [1], [0, 0, 1, 1], [], []>} : vector<8x8xf32>, vector<8x256xf32>, vector<8x256xf32> -> vector<8x256xf32>
    %102 = arith.addf %95, %98 : vector<8x256xf32>
    %103 = arith.addf %102, %101 : vector<8x256xf32>
    %c3_60 = arith.constant 3 : index
    %c0_61 = arith.constant 0 : index
    %c0_62 = arith.constant 0 : index
    %104 = vector.load %arg8[%c3_60, %c0_61, %c0_62] : memref<9x8x8xf32, #tpu.memory_space<vmem>>, vector<1x8x8xf32>
    %105 = vector.shape_cast %104 : vector<1x8x8xf32> to vector<8x8xf32>
    %cst_63 = arith.constant dense<0.000000e+00> : vector<8x256xf32>
    %106 = tpu.matmul %105, %90, %cst_63 {dimension_numbers = #tpu.dot_dimension_numbers<[1], [0], [0], [1], [0, 0, 1, 1], [], []>} : vector<8x8xf32>, vector<8x256xf32>, vector<8x256xf32> -> vector<8x256xf32>
    %c4_64 = arith.constant 4 : index
    %c0_65 = arith.constant 0 : index
    %c0_66 = arith.constant 0 : index
    %107 = vector.load %arg8[%c4_64, %c0_65, %c0_66] : memref<9x8x8xf32, #tpu.memory_space<vmem>>, vector<1x8x8xf32>
    %108 = vector.shape_cast %107 : vector<1x8x8xf32> to vector<8x8xf32>
    %cst_67 = arith.constant dense<0.000000e+00> : vector<8x256xf32>
    %109 = tpu.matmul %108, %87, %cst_67 {dimension_numbers = #tpu.dot_dimension_numbers<[1], [0], [0], [1], [0, 0, 1, 1], [], []>} : vector<8x8xf32>, vector<8x256xf32>, vector<8x256xf32> -> vector<8x256xf32>
    %c5_68 = arith.constant 5 : index
    %c0_69 = arith.constant 0 : index
    %c0_70 = arith.constant 0 : index
    %110 = vector.load %arg8[%c5_68, %c0_69, %c0_70] : memref<9x8x8xf32, #tpu.memory_space<vmem>>, vector<1x8x8xf32>
    %111 = vector.shape_cast %110 : vector<1x8x8xf32> to vector<8x8xf32>
    %cst_71 = arith.constant dense<0.000000e+00> : vector<8x256xf32>
    %112 = tpu.matmul %111, %92, %cst_71 {dimension_numbers = #tpu.dot_dimension_numbers<[1], [0], [0], [1], [0, 0, 1, 1], [], []>} : vector<8x8xf32>, vector<8x256xf32>, vector<8x256xf32> -> vector<8x256xf32>
    %113 = arith.addf %106, %109 : vector<8x256xf32>
    %114 = arith.addf %113, %112 : vector<8x256xf32>
    %c6_72 = arith.constant 6 : index
    %c0_73 = arith.constant 0 : index
    %c0_74 = arith.constant 0 : index
    %115 = vector.load %arg8[%c6_72, %c0_73, %c0_74] : memref<9x8x8xf32, #tpu.memory_space<vmem>>, vector<1x8x8xf32>
    %116 = vector.shape_cast %115 : vector<1x8x8xf32> to vector<8x8xf32>
    %cst_75 = arith.constant dense<0.000000e+00> : vector<8x256xf32>
    %117 = tpu.matmul %116, %90, %cst_75 {dimension_numbers = #tpu.dot_dimension_numbers<[1], [0], [0], [1], [0, 0, 1, 1], [], []>} : vector<8x8xf32>, vector<8x256xf32>, vector<8x256xf32> -> vector<8x256xf32>
    %c7_76 = arith.constant 7 : index
    %c0_77 = arith.constant 0 : index
    %c0_78 = arith.constant 0 : index
    %118 = vector.load %arg8[%c7_76, %c0_77, %c0_78] : memref<9x8x8xf32, #tpu.memory_space<vmem>>, vector<1x8x8xf32>
    %119 = vector.shape_cast %118 : vector<1x8x8xf32> to vector<8x8xf32>
    %cst_79 = arith.constant dense<0.000000e+00> : vector<8x256xf32>
    %120 = tpu.matmul %119, %87, %cst_79 {dimension_numbers = #tpu.dot_dimension_numbers<[1], [0], [0], [1], [0, 0, 1, 1], [], []>} : vector<8x8xf32>, vector<8x256xf32>, vector<8x256xf32> -> vector<8x256xf32>
    %c8_80 = arith.constant 8 : index
    %c0_81 = arith.constant 0 : index
    %c0_82 = arith.constant 0 : index
    %121 = vector.load %arg8[%c8_80, %c0_81, %c0_82] : memref<9x8x8xf32, #tpu.memory_space<vmem>>, vector<1x8x8xf32>
    %122 = vector.shape_cast %121 : vector<1x8x8xf32> to vector<8x8xf32>
    %cst_83 = arith.constant dense<0.000000e+00> : vector<8x256xf32>
    %123 = tpu.matmul %122, %92, %cst_83 {dimension_numbers = #tpu.dot_dimension_numbers<[1], [0], [0], [1], [0, 0, 1, 1], [], []>} : vector<8x8xf32>, vector<8x256xf32>, vector<8x256xf32> -> vector<8x256xf32>
    %124 = arith.addf %117, %120 : vector<8x256xf32>
    %125 = arith.addf %124, %123 : vector<8x256xf32>
    %126 = vector.broadcast %88 : vector<8x1xf32> to vector<8x256xf32>
    %127 = arith.addf %114, %126 : vector<8x256xf32>
    %c16_i32_84 = arith.constant 16 : i32
    %128 = tpu.dynamic_rotate %103 by %c16_i32_84 dim 1 : vector<8x256xf32>, i32 -> vector<8x256xf32>
    %129 = arith.mulf %9, %128 : vector<8x256xf32>
    %130 = arith.addf %127, %129 : vector<8x256xf32>
    %c240_i32_85 = arith.constant 240 : i32
    %131 = tpu.dynamic_rotate %125 by %c240_i32_85 dim 1 : vector<8x256xf32>, i32 -> vector<8x256xf32>
    %132 = arith.mulf %12, %131 : vector<8x256xf32>
    %133 = arith.addf %130, %132 : vector<8x256xf32>
    %c0_86 = arith.constant 0 : index
    %c0_87 = arith.constant 0 : index
    %134 = vector.load %arg10[%c0_86, %c0_87] : memref<8x1xf32, #tpu.memory_space<vmem>>, vector<8x1xf32>
    %c0_88 = arith.constant 0 : index
    %c0_89 = arith.constant 0 : index
    %135 = vector.load %arg11[%c0_88, %c0_89] : memref<8x1xf32, #tpu.memory_space<vmem>>, vector<8x1xf32>
    %cst_90 = arith.constant dense<0.000000e+00> : vector<8xf32>
    %136 = vector.multi_reduction <add>, %133, %cst_90 [1] : vector<8x256xf32> to vector<8xf32>
    %137 = vector.shape_cast %136 : vector<8xf32> to vector<8x1xf32>
    %cst_91 = arith.constant 3.906250e-03 : f32
    %138 = vector.broadcast %cst_91 : f32 to vector<8x1xf32>
    %139 = arith.mulf %137, %138 : vector<8x1xf32>
    %140 = vector.broadcast %139 : vector<8x1xf32> to vector<8x256xf32>
    %141 = arith.subf %133, %140 : vector<8x256xf32>
    %142 = arith.mulf %141, %141 : vector<8x256xf32>
    %cst_92 = arith.constant dense<0.000000e+00> : vector<8xf32>
    %143 = vector.multi_reduction <add>, %142, %cst_92 [1] : vector<8x256xf32> to vector<8xf32>
    %144 = vector.shape_cast %143 : vector<8xf32> to vector<8x1xf32>
    %cst_93 = arith.constant 3.906250e-03 : f32
    %145 = vector.broadcast %cst_93 : f32 to vector<8x1xf32>
    %146 = arith.mulf %144, %145 : vector<8x1xf32>
    %cst_94 = arith.constant 9.99999974E-6 : f32
    %147 = vector.broadcast %cst_94 : f32 to vector<8x1xf32>
    %148 = arith.addf %146, %147 : vector<8x1xf32>
    %149 = math.rsqrt %148 : vector<8x1xf32>
    %150 = arith.mulf %149, %134 : vector<8x1xf32>
    %151 = vector.broadcast %150 : vector<8x1xf32> to vector<8x256xf32>
    %152 = arith.mulf %141, %151 : vector<8x256xf32>
    %153 = vector.broadcast %135 : vector<8x1xf32> to vector<8x256xf32>
    %154 = arith.addf %152, %153 : vector<8x256xf32>
    %155 = arith.addf %154, %14 : vector<8x256xf32>
    %c0_95 = arith.constant 0 : index
    %c0_96 = arith.constant 0 : index
    %c0_97 = arith.constant 0 : index
    %156 = vector.load %arg12[%c0_95, %c0_96, %c0_97] : memref<1x8x256xf32, #tpu.memory_space<vmem>>, vector<1x8x256xf32>
    %157 = vector.shape_cast %156 : vector<1x8x256xf32> to vector<8x256xf32>
    %158 = vector.shape_cast %155 : vector<8x256xf32> to vector<1x8x256xf32>
    tpu.vector_store %arg12[%c0_95, %c0_96, %c0_97], %158 {strides = array<i32>} : memref<1x8x256xf32, #tpu.memory_space<vmem>>, vector<1x8x256xf32>,
    return
  }
  func.func @transform_0(%arg0: i32) -> (i32, i32, i32) {
    %c0_i32 = arith.constant 0 : i32
    %c0_i32_0 = arith.constant 0 : i32
    %c0_i32_1 = arith.constant 0 : i32
    return %arg0, %c0_i32, %c0_i32_0 : i32, i32, i32
  }
  func.func @transform_1(%arg0: i32) -> (i32, i32) {
    %c0_i32 = arith.constant 0 : i32
    %c0_i32_0 = arith.constant 0 : i32
    %c0_i32_1 = arith.constant 0 : i32
    return %c0_i32, %c0_i32_0 : i32, i32
  }
  func.func @transform_2(%arg0: i32) -> (i32, i32, i32) {
    %c0_i32 = arith.constant 0 : i32
    %c0_i32_0 = arith.constant 0 : i32
    %c0_i32_1 = arith.constant 0 : i32
    %c0_i32_2 = arith.constant 0 : i32
    return %c0_i32, %c0_i32_0, %c0_i32_1 : i32, i32, i32
  }
  func.func @transform_3(%arg0: i32) -> (i32, i32) {
    %c0_i32 = arith.constant 0 : i32
    %c0_i32_0 = arith.constant 0 : i32
    %c0_i32_1 = arith.constant 0 : i32
    return %c0_i32, %c0_i32_0 : i32, i32
  }
  func.func @transform_4(%arg0: i32) -> (i32, i32) {
    %c0_i32 = arith.constant 0 : i32
    %c0_i32_0 = arith.constant 0 : i32
    %c0_i32_1 = arith.constant 0 : i32
    return %c0_i32, %c0_i32_0 : i32, i32
  }
  func.func @transform_5(%arg0: i32) -> (i32, i32) {
    %c0_i32 = arith.constant 0 : i32
    %c0_i32_0 = arith.constant 0 : i32
    %c0_i32_1 = arith.constant 0 : i32
    return %c0_i32, %c0_i32_0 : i32, i32
  }
  func.func @transform_6(%arg0: i32) -> i32 {
    %c0_i32 = arith.constant 0 : i32
    %c0_i32_0 = arith.constant 0 : i32
    return %c0_i32 : i32
  }
  func.func @transform_7(%arg0: i32) -> (i32, i32, i32) {
    %c0_i32 = arith.constant 0 : i32
    %c0_i32_0 = arith.constant 0 : i32
    %c0_i32_1 = arith.constant 0 : i32
    %c0_i32_2 = arith.constant 0 : i32
    return %c0_i32, %c0_i32_0, %c0_i32_1 : i32, i32, i32
  }
  func.func @transform_8(%arg0: i32) -> (i32, i32) {
    %c0_i32 = arith.constant 0 : i32
    %c0_i32_0 = arith.constant 0 : i32
    %c0_i32_1 = arith.constant 0 : i32
    return %c0_i32, %c0_i32_0 : i32, i32
  }
  func.func @transform_9(%arg0: i32) -> (i32, i32) {
    %c0_i32 = arith.constant 0 : i32
    %c0_i32_0 = arith.constant 0 : i32
    %c0_i32_1 = arith.constant 0 : i32
    return %c0_i32, %c0_i32_0 : i32, i32
  }
  func.func @transform_10(%arg0: i32) -> (i32, i32) {
    %c0_i32 = arith.constant 0 : i32
    %c0_i32_0 = arith.constant 0 : i32
    %c0_i32_1 = arith.constant 0 : i32
    return %c0_i32, %c0_i32_0 : i32, i32
  }
  func.func @transform_11(%arg0: i32) -> (i32, i32, i32) {
    %c0_i32 = arith.constant 0 : i32
    %c0_i32_0 = arith.constant 0 : i32
    %c0_i32_1 = arith.constant 0 : i32
    return %arg0, %c0_i32, %c0_i32_0 : i32, i32, i32
  }
}

</mosaic_0001>

<bundles_post_ra>
// kernel: tpu_custom_call.1
= control target key start
LH: loop header
LB: loop body
LE: loop exit
PB: predicated region body
PF: predicated region fallthrough
CT: control target
= control target key end

     0   :  { %s2673_s0 = inlined_call_operand.vmem [shape: f32[2,8,256], index: 0, kind: input, shape index: {}]   ;;  %s2674_s1 = inlined_call_operand.vmem [shape: f32[4,256], index: 1, kind: input, shape index: {}]   ;;  %s2675_s2 = inlined_call_operand.vmem [shape: f32[9,8,8], index: 2, kind: input, shape index: {}]   ;;  %s2676_s3 = inlined_call_operand.vmem [shape: f32[8,1], index: 3, kind: input, shape index: {}]   ;;  %s2677_s4 = inlined_call_operand.vmem [shape: f32[8,1], index: 4, kind: input, shape index: {}]   ;;  %s2678_s5 = inlined_call_operand.vmem [shape: f32[8,1], index: 5, kind: input, shape index: {}]   ;;  %s2679_s6 = inlined_call_operand.<no memory space> [shape: f32[1], index: 6, kind: input, shape index: {}]   ;;  %s2680_s7 = inlined_call_operand.vmem [shape: f32[9,8,8], index: 7, kind: input, shape index: {}]   ;;  %s2681_s8 = inlined_call_operand.vmem [shape: f32[8,1], index: 8, kind: input, shape index: {}]   ;;  %s2682_s9 = inlined_call_operand.vmem [shape: f32[8,1], index: 9, kind: input, shape index: {}]   ;;  %s2683_s10 = inlined_call_operand.vmem [shape: f32[8,1], index: 10, kind: input, shape index: {}]   ;;  %s2684_s11 = inlined_call_operand.hbm [shape: f32[2,8,256], index: 11, kind: output, shape index: {}]  }
   0x1   :  { %16 = sst [smem:[#allocation2]] %s2679_s6 }
   0x2   :  { %17 = vsyncpa [#allocation4], 0 }
   0x3   :  { %19 = vsyncpa [#allocation4 + $0x1], 0  ;;  %s2340_s19 = smov 0   ;;  %s2342_s20 = smov 0  }
   0x4   :  { %s2344_s21 = smov 0   ;;  %s2346_s22 = smov 0  }
   0x5 LB: > { %s2361_s6 = sadd.s32 4294967295, %s2268_s22   ;;  %s2083_s23 = sadd.s32 4294967294, %s2268_s22   ;;  %s2268_s22 = sphi %s2346_s22, %s2690_s22   ;;  %s2264_s21 = sphi %s2344_s21, %s2689_s21   ;;  %s2260_s20 = sphi %s2342_s20, %s2688_s20   ;;  %s2256_s19 = sphi %s2340_s19, %s2687_s19  }
   0x6   : > { %s2365_s24 = sadd.s32 1, %s2268_s22   ;;  %s268_s25 = sadd.s32 1, %s2264_s21 }
   0x7   : > { %s265_s26 = ssub.s32 %s2268_s22, %s2365_s24  ;;  %p278_p0 = scmp.ne.s32.totalorder %s2264_s21, %s2260_s20 }
   0x8   : > { %p266_p1 = scmp.eq.s32.totalorder %s265_s26, 0  ;;  %p279_p2 = scmp.eq.s32.totalorder %s2361_s6, 1 }
   0x9   : > { %p284_p3 = scmp.ne.s32.totalorder %s2260_s20, %s2256_s19  ;;  %p285_p4 = scmp.eq.s32.totalorder %s2083_s23, 1 }
   0xa   : > { %s2376_s27 = scalar_select %p266_p1, %s2264_s21, %s268_s25  }
   0xb   : > { %p2378_p5 = por %p279_p2, %p278_p0  ;;  %p2382_p6 = por %p285_p4, %p284_p3 }
   0xc   : > { %p2086_p7 = scmp.ge.s32.totalorder %s2268_s22, 1  ;;  %p341_p8 = scmp.lt.s32.totalorder %s2268_s22, 3 }
   0xe   : > { %p342_p9 = pnand %p2086_p7, %p341_p8 }
   0xf   : > { %p381_p10 = scmp.lt.s32.totalorder (!%p342_p9), %s2361_s6, 1  ;;  %v2270_v0 = vmov (!%p342_p9), 0.0   ;;  %v2090_v2 = vld [vmem:[%s2675_s2 + $0x8] sm:$0xff] (!%p342_p9)  ;;  %s2271_s18 = smov (!%p342_p9), 127   ;;  %vm486_vm0 = vcmask (!%p342_p9), 64512   ;;  %v2096_v4 = vld [vmem:[%s2675_s2 + $0x20] sm:$0xff] (!%p342_p9)  ;;  %v388_v7 = vlaneseq (!%p342_p9) }
  0x10   : > { %345 = sbr.rel (%p342_p9) target bundleno = 1900 (0x76c), region = 64  ;;  %554 = vmatprep.mubr.f32.mxu0 (!%p342_p9), %v2270_v0  ;;  %784 = vmatprep.mubr.f32.mxu1 (!%p342_p9), %v2270_v0  ;;  %s2272_s23 = smov (!%p342_p9), 1   ;;  %v462_v5 = vld [vmem:[%s2676_s3] sm:$0xff] (!%p342_p9)  ;;  %v2273_v6 = vmov (!%p342_p9), 0   ;;  %v2092_v35 = vld [vmem:[%s2675_s2 + $0x10] sm:$0xff] (!%p342_p9)  ;;  %v2098_v36 = vld [vmem:[%s2675_s2 + $0x28] sm:$0xff] (!%p342_p9) }
  0x11   : > { %2200 = vset.pattern.permute.xlu0 (!%p342_p9), %v2273_v6  ;;  %2201 = vset.pattern.permute.xlu1 (!%p342_p9), %v2273_v6  ;;  %v2424_v8 = vshrl.u32 (!%p342_p9), %v388_v7, 7  ;;  %v2432_v12 = vld [vmem:[%s2674_s1] sm:$0xff] (!%p342_p9)  ;;  %v2435_v14 = vand.u32 (!%p342_p9), 127, %v388_v7  ;;  %v2095_v38 = vld [vmem:[%s2675_s2 + $0x18] sm:$0xff] (!%p342_p9)  ;;  %v2101_v41 = vld [vmem:[%s2675_s2 + $0x30] sm:$0xff] (!%p342_p9)  ;;  %s1233_s17 = sld [smem:[#allocation2]] (!%p342_p9) }
  0x12   : > { %v483_v37 = vld [vmem:[%s2675_s2] sm:$0xff] (!%p342_p9)  ;;  %v2102_v39 = vld [vmem:[%s2675_s2 + $0x38] sm:$0xff] (!%p342_p9)  ;;  %s2276_s13 = smov (!%p342_p9), [#allocation3]  }
  0x13   : > { %v408_v9 = vsub.s32 (!%p342_p9), 1, %v2424_v8  ;;  %v412_v10 = vsub.s32 (!%p342_p9), 5, %v2424_v8  ;;  %v394_v11 = vsub.s32 (!%p342_p9), 4, %v2424_v8  ;;  %v390_v13 = vsub.s32 (!%p342_p9), 0, %v2424_v8  ;;  %v2104_v40 = vld [vmem:[%s2675_s2 + $0x40] sm:$0xff] (!%p342_p9)  ;;  %s2210_s14 = sshll.u32 (!%p342_p9), %s2276_s13, 4  ;;  %s2211_s14 = int_to_ptr.vmem [resolvable:$false] %s2210_s14 }
  0x14   : > { %vm478_vm1 = vcmp.lt.s32.totalorder (!%p342_p9), %v2435_v14, 127  ;;  %vm469_vm2 = vcmp.lt.s32.totalorder (!%p342_p9), %v2435_v14, 1  ;;  %v426_v49 = vsub.s32 (!%p342_p9), 2, %v2424_v8  ;;  %v430_v50 = vsub.s32 (!%p342_p9), 6, %v2424_v8 }
  0x15   : > { %v409_v15 = vrot.slane (!%p342_p9), %v2432_v12, %v408_v9  ;;  %v413_v16 = vrot.slane (!%p342_p9), %v2432_v12, %v412_v10  ;;  %v395_v17 = vrot.slane (!%p342_p9), %v2432_v12, %v394_v11  ;;  %v391_v18 = vrot.slane (!%p342_p9), %v2432_v12, %v390_v13 }
  0x16   : > { %v427_v51 = vrot.slane (!%p342_p9), %v2432_v12, %v426_v49  ;;  %v431_v52 = vrot.slane (!%p342_p9), %v2432_v12, %v430_v50  ;;  %v444_v53 = vsub.s32 (!%p342_p9), 3, %v2424_v8  ;;  %v448_v54 = vsub.s32 (!%p342_p9), 7, %v2424_v8  ;;  %v2113_v50 = vld [vmem:[%s2680_s7 + $0x20] sm:$0xff] (!%p342_p9) }
  0x17   : > { %s382_s30 = scalar_select %p381_p10, %s2361_s6, 1  ;;  %v2442_v21 = vrot.slane %v409_v15, %v408_v9  ;;  %v2444_v22 = vrot.slane %v413_v16, %v408_v9  ;;  %v2446_v23 = vrot.slane %v395_v17, %v390_v13  ;;  %v2449_v24 = vrot.slane %v391_v18, %v390_v13 }
  0x18   : > { %vm1184_vm3 = vcmp.lt.s32.totalorder %v2435_v14, 16  ;;  %v2511_v56 = vrot.slane %v427_v51, %v426_v49  ;;  %v2513_v57 = vrot.slane %v431_v52, %v426_v49  ;;  %v445_v58 = vrot.slane %v2432_v12, %v444_v53  ;;  %v2107_v49 = vld [vmem:[%s2680_s7 + $0x8] sm:$0xff]  ;;  %v1241_v51 = vld [vmem:[%s2681_s8] sm:$0xff] }
  0x19   : > { %s2129_s12 = sshll.u32 %s382_s30, 4  ;;  %s2274_s30 = smov 16   ;;  %v449_v59 = vrot.slane %v2432_v12, %v448_v54  ;;  %vm1195_vm4 = vcmp.lt.s32.totalorder %v2435_v14, 112 }
  0x1a   : > { %s385_s15 = scalar_lea.vmem %s2673_s0, %s2129_s12  ;;  %s2275_s12 = smov 112  }
  0x1b   : > { %v2395_v1 = vld [vmem:[%s385_s15] sm:$0xff]  ;;  %v2404_v3 = vld [vmem:[%s385_s15 + $0x8] sm:$0xff]  ;;  %s378_s15 = sand.u32 1, %s2260_s20  }
  0x1c   : > { %474 = vrot.lane.b32.xlu0 %v2395_v1, %s2271_s18  ;;  %463 = vrot.lane.b32.xlu1 %v2395_v1, %s2272_s23  ;;  %s2087_s16 = sshll.u32 %s378_s15, 4 }
  0x1d   : > { %490 = vmatprep.subr.mxu0 %v2404_v3  ;;  %720 = vmatprep.subr.mxu1 %v2404_v3 }
  0x1e   : > { %491 = vmatpush1.msra.mxu0 %v2395_v1  ;;  %721 = vmatpush1.msra.mxu1 %v2395_v1 }
  0x1f   : > { %2091 = vmatmul.mubr.msk.f32.vlgmr.msra.gmra.mrb[0].mxu0 %vm486_vm0, %v2090_v2  ;;  %2097 = vmatmul.mubr.msk.f32.vlgmr.msra.gmra.mrb[0].mxu1 %vm486_vm0, %v2096_v4  ;;  %v2524_v4 = vrot.slane %v445_v58, %v444_v53 }
  0x20   : > { %476 = vrot.lane.b32.xlu0 %v2404_v3, %s2271_s18  ;;  %465 = vrot.lane.b32.xlu1 %v2404_v3, %s2272_s23 }
  0x21   : > { %630 = vmatprep.mubr.f32.mxu0 %v2270_v0  ;;  %860 = vmatprep.mubr.f32.mxu1 %v2270_v0 }
  0x24   : > { %1175 = vperm.xlu0 %2200, %v462_v5   ;;  %v2526_v5 = vrot.slane %v449_v59, %v444_v53 }
  0x8e   : > { %v475_v19 = vpop.permute.xlu0 %474  ;;  %v464_v20 = vpop.permute.xlu1 %463 }
  0x92   : > { %v477_v25 = vpop.permute.xlu0 %476  ;;  %v466_v26 = vpop.permute.xlu1 %465 }
  0x93   : > { %v479_v27 = vsel %vm478_vm1, %v475_v19, %v477_v25  ;;  %v480_v28 = vsel %vm478_vm1, %v477_v25, %v475_v19  ;;  %v470_v29 = vsel %vm469_vm2, %v464_v20, %v466_v26  ;;  %v471_v30 = vsel %vm469_vm2, %v466_v26, %v464_v20 }
  0x94   : > { %v481_v31 = vmul.f32 %v479_v27, %v2442_v21  ;;  %v482_v32 = vmul.f32 %v480_v28, %v2444_v22  ;;  %v473_v33 = vmul.f32 %v470_v29, %v2446_v23  ;;  %v472_v34 = vmul.f32 %v471_v30, %v2449_v24 }
  0x96   : > { %566 = vmatprep.subr.mxu0 %v482_v32  ;;  %796 = vmatprep.subr.mxu1 %v482_v32 }
  0x97   : > { %567 = vmatpush1.msra.mxu0 %v481_v31  ;;  %797 = vmatpush1.msra.mxu1 %v481_v31 }
  0x98   : > { %2093 = vmatmul.mubr.msk.f32.vlgmr.msra.gmra.mrb[0].mxu0 %vm486_vm0, %v2092_v35  ;;  %640 = vmatprep.subr.mxu0 %v473_v33  ;;  %v1202_v35 = vld [vmem:[%s2677_s4] sm:$0xff] }
  0x99   : > { %870 = vmatprep.subr.mxu1 %v473_v33  ;;  %641 = vmatpush1.msra.mxu0 %v472_v34 }
  0x9a   : > { %2099 = vmatmul.mubr.msk.f32.vlgmr.msra.gmra.mrb[0].mxu1 %vm486_vm0, %v2098_v36  ;;  %704 = vmatprep.mubr.f32.mxu0 %v2270_v0 }
  0x9b   : > { %871 = vmatpush1.msra.mxu1 %v472_v34  ;;  %950 = vmatprep.subr.mxu0 %v2404_v3 }
  0x9c   : > { %934 = vmatprep.mubr.f32.mxu1 %v2270_v0 }
  0xa0   : > { %2094 = vmatmul.mubr.msk.f32.vlgmr.msra.gmra.mrb[0].mxu0 %vm486_vm0, %v483_v37 }
  0xa1   : > { %951 = vmatpush1.msra.mxu0 %v2395_v1  ;;  %1014 = vmatprep.mubr.f32.mxu0 %v2270_v0 }
  0xa2   : > { %1026 = vmatprep.subr.mxu0 %v482_v32  ;;  %2100 = vmatmul.mubr.msk.f32.vlgmr.msra.gmra.mrb[0].mxu1 %vm486_vm0, %v2095_v38 }
  0xa3   : > { %1328 = vmatprep.mubr.f32.mxu1 %v2270_v0  ;;  %v1176_v60 = vpop.permute.xlu0 %1175 }
  0xa4   : > { %2103 = vmatmul.mubr.msk.f32.vlgmr.msra.gmra.mrb[2].mxu0 %vm486_vm0, %v2102_v39 }
  0xa5   : > { %1027 = vmatpush1.msra.mxu0 %v481_v31  ;;  %1090 = vmatprep.mubr.f32.mxu0 %v2270_v0  ;;  %v1203_v31 = vld [vmem:[%s2678_s5] sm:$0xff] }
  0xa6   : > { %1100 = vmatprep.subr.mxu0 %v473_v33 }
  0xac   : > { %2105 = vmatmul.mubr.msk.f32.vlgmr.msra.gmra.mrb[2].mxu0 %vm486_vm0, %v2104_v40 }
  0xad   : > { %1101 = vmatpush1.msra.mxu0 %v472_v34  ;;  %1164 = vmatprep.mubr.f32.mxu0 %v2270_v0 }
  0xb4   : > { %2106 = vmatmul.mubr.msk.f32.vlgmr.msra.gmra.mrb[2].mxu0 %vm486_vm0, %v2101_v41 }
  0xb5   : > { %1558 = vmatprep.mubr.f32.mxu0 %v2270_v0 }
 0x173   : > { %v706_v42 = vpop.f32.mrb[0].mxu0 }
 0x174   : > { %1180 = vrot.lane.b32.xlu1 %v706_v42, %s2274_s30  ;;  %v708_v43 = vpop.f32.mrb[1].mxu0  ;;  %v1236_v42 = vstv %s1233_s17 }
 0x175   : > { %v936_v44 = vpop.f32.mrb[0].mxu1 }
 0x176   : > { %v938_v45 = vpop.f32.mrb[1].mxu1  ;;  %v1178_v7 = vadd.f32 %v1176_v60, %v936_v44 }
 0x177   : > { %v1179_v8 = vadd.f32 %v1176_v60, %v938_v45 }
 0x178   : > { %1182 = vrot.lane.b32.xlu1 %v708_v43, %s2274_s30 }
 0x187   : > { %v1166_v46 = vpop.f32.mrb[2].mxu0 }
 0x188   : > { %1191 = vrot.lane.b32.xlu0 %v1166_v46, %s2275_s12  ;;  %v1168_v47 = vpop.f32.mrb[3].mxu0 }
 0x189   : > { %1193 = vrot.lane.b32.xlu1 %v1168_v47, %s2275_s12 }
 0x1e6   : > { %v1181_v48 = vpop.permute.xlu1 %1180 }
 0x1ea   : > { %v1183_v55 = vpop.permute.xlu1 %1182 }
 0x1eb   : > { %v1185_v61 = vsel %vm1184_vm3, %v1181_v48, %v1183_v55  ;;  %v1186_v62 = vsel %vm1184_vm3, %v1183_v55, %v1181_v48 }
 0x1ec   : > { %v1187_v63 = vmul.f32 %v1186_v62, %v2511_v56  ;;  %v1188_v2 = vmul.f32 %v1185_v61, %v2513_v57  ;;  %v2109_v61 = vld [vmem:[%s2680_s7 + $0x10] sm:$0xff]  ;;  %v2115_v62 = vld [vmem:[%s2680_s7 + $0x28] sm:$0xff] }
 0x1ee   : > { %v1189_v12 = vadd.f32 %v1187_v63, %v1178_v7  ;;  %v1190_v13 = vadd.f32 %v1188_v2, %v1179_v8  ;;  %v1258_v7 = vld [vmem:[%s2680_s7] sm:$0xff] }
 0x1ef   : > { %v2121_v8 = vld [vmem:[%s2680_s7 + $0x40] sm:$0xff] }
 0x1fa   : > { %v1192_v6 = vpop.permute.xlu0 %1191 }
 0x1fb   : > { %v1194_v9 = vpop.permute.xlu1 %1193 }
 0x1fc   : > { %v1196_v10 = vsel %vm1195_vm4, %v1192_v6, %v1194_v9  ;;  %v1197_v11 = vsel %vm1195_vm4, %v1194_v9, %v1192_v6  ;;  %v2118_v9 = vld [vmem:[%s2680_s7 + $0x30] sm:$0xff] }
 0x1fd   : > { %v1198_v15 = vmul.f32 %v1196_v10, %v2524_v4  ;;  %v1199_v16 = vmul.f32 %v1197_v11, %v2526_v5 }
 0x1ff   : > { %v1200_v17 = vadd.f32 %v1198_v15, %v1189_v12  ;;  %v1201_v18 = vadd.f32 %v1199_v16, %v1190_v13 }
 0x201   : > { %v1204_v19 = vadd.f32 %v1201_v18, %v1200_v17 }
 0x203   : > { %1205 = vadd.xlane.f32.xlu0 %v1204_v19 }
 0x290   : > { %v1206_v20 = vpop.xlane.xlu0 %1205 }
 0x291   : > { %v1207_v25 = vmul.f32 0.00390625, %v1206_v20 }
 0x293   : > { %v1208_v26 = vsub.f32 %v1200_v17, %v1207_v25  ;;  %v1209_v27 = vsub.f32 %v1201_v18, %v1207_v25 }
 0x295   : > { %v1210_v28 = vmul.f32 %v1208_v26, %v1208_v26  ;;  %v1211_v29 = vmul.f32 %v1209_v27, %v1209_v27 }
 0x297   : > { %v1212_v30 = vadd.f32 %v1211_v29, %v1210_v28 }
 0x299   : > { %1213 = vadd.xlane.f32.xlu1 %v1212_v30 }
 0x2aa   : > { %1228 = vperm.xlu1 %2201, %v1203_v31  }
 0x326   : > { %v1214_v32 = vpop.xlane.xlu1 %1213 }
 0x327   : > { %v1215_v33 = vmul.f32 0.00390625, %v1214_v32 }
 0x329   : > { %v1216_v34 = vadd.f32 1e-05, %v1215_v33 }
 0x32a   : > { %v1229_v39 = vpop.permute.xlu1 %1228 }
 0x32b   : > { %2202 = vrsqrt.f32 %v1216_v34 }
 0x335   : > { %v2203_v36 = vpop.eup %2202 }
 0x336   : > { %v1218_v37 = vmul.f32 %v2203_v36, %v1202_v35 }
 0x338   : > { %1221 = vperm.xlu0 %2200, %v1218_v37  }
 0x3b7   : > { %v1222_v38 = vpop.permute.xlu0 %1221 }
 0x3b8   : > { %v1224_v40 = vmul.f32 %v1222_v38, %v1208_v26  ;;  %v1225_v41 = vmul.f32 %v1222_v38, %v1209_v27 }
 0x3ba   : > { %v1231_v43 = vadd.f32 %v1229_v39, %v1224_v40  ;;  %v1232_v44 = vadd.f32 %v1229_v39, %v1225_v41 }
 0x3bc   : > { %vm1234_vm5 = vcmp.ge.f32.partialorder %v1231_v43, 0.0  ;;  %vm1235_vm6 = vcmp.ge.f32.partialorder %v1232_v44, 0.0  ;;  %v1237_v45 = vmul.f32 %v1236_v42, %v1231_v43  ;;  %v1238_v46 = vmul.f32 %v1236_v42, %v1232_v44 }
 0x3be   : > { %v1240_v47 = vsel %vm1235_vm6, %v1232_v44, %v1238_v46  ;;  %v1239_v48 = vsel %vm1234_vm5, %v1231_v43, %v1237_v45  ;;  %v1974_v46 = vld [vmem:[%s2682_s9] sm:$0xff] }
 0x3bf   : > { %1252 = vrot.lane.b32.xlu1 %v1240_v47, %s2271_s18  ;;  %1264 = vmatprep.subr.mxu1 %v1240_v47 }
 0x3c0   : > { %1494 = vmatprep.subr.mxu0 %v1240_v47  ;;  %1250 = vrot.lane.b32.xlu0 %v1239_v48, %s2271_s18  ;;  %s2130_s18 = sshll.u32 %s2361_s6, 8  ;;  %s2010_s6 = scalar_lea.sflag [#allocation4], %s378_s15 }
 0x3c1   : > { %1265 = vmatpush1.msra.mxu1 %v1239_v48  ;;  %1495 = vmatpush1.msra.mxu0 %v1239_v48 }
 0x3c2   : > { %2108 = vmatmul.mubr.msk.f32.vlgmr.msra.gmra.mrb[2].mxu1 %vm486_vm0, %v2107_v49  ;;  %2114 = vmatmul.mubr.msk.f32.vlgmr.msra.gmra.mrb[4].mxu0 %vm486_vm0, %v2113_v50 }
 0x3c3   : > { %1244 = vrot.lane.b32.xlu1 %v1240_v47, %s2272_s23  ;;  %1404 = vmatprep.mubr.f32.mxu1 %v2270_v0 }
 0x3c4   : > { %1242 = vrot.lane.b32.xlu0 %v1239_v48, %s2272_s23  ;;  %1634 = vmatprep.mubr.f32.mxu0 %v2270_v0  ;;  %s380_s23 = scalar_lea.vmem [#allocation3], %s2087_s16  ;;  %s2212_s16 = scalar_lea.vmem %s2211_s14, 512 }
 0x3c5   : > { %s2024_s17 = sshll.u32 %s380_s23, 4  ;;  %s2633_s17 = int_to_ptr.vmem [resolvable:$true] %s2024_s17 }
 0x3c6   : > { %p2213_p0 = scmp.lt.s32.totalorder %s2633_s17, %s2211_s14 }
 0x3c8   : > { %1949 = vperm.xlu0 %2200, %v1241_v51  }
 0x431   : > { %v1253_v52 = vpop.permute.xlu1 %1252 }
 0x432   : > { %v1251_v53 = vpop.permute.xlu0 %1250 }
 0x433   : > { %v1254_v54 = vsel %vm478_vm1, %v1251_v53, %v1253_v52  ;;  %v1255_v55 = vsel %vm478_vm1, %v1253_v52, %v1251_v53 }
 0x434   : > { %v1256_v58 = vmul.f32 %v1254_v54, %v2442_v21  ;;  %v1257_v59 = vmul.f32 %v1255_v55, %v2444_v22 }
 0x435   : > { %v1245_v60 = vpop.permute.xlu1 %1244 }
 0x436   : > { %v1243_v63 = vpop.permute.xlu0 %1242  ;;  %1340 = vmatprep.subr.mxu1 %v1257_v59  ;;  %1570 = vmatprep.subr.mxu0 %v1257_v59 }
 0x437   : > { %v1246_v2 = vsel %vm469_vm2, %v1243_v63, %v1245_v60  ;;  %v1247_v21 = vsel %vm469_vm2, %v1245_v60, %v1243_v63  ;;  %1341 = vmatpush1.msra.mxu1 %v1256_v58  ;;  %1571 = vmatpush1.msra.mxu0 %v1256_v58 }
 0x438   : > { %v1248_v22 = vmul.f32 %v1247_v21, %v2449_v24  ;;  %v1249_v6 = vmul.f32 %v1246_v2, %v2446_v23  ;;  %2110 = vmatmul.mubr.msk.f32.vlgmr.msra.gmra.mrb[2].mxu1 %vm486_vm0, %v2109_v61  ;;  %2116 = vmatmul.mubr.msk.f32.vlgmr.msra.gmra.mrb[4].mxu0 %vm486_vm0, %v2115_v62  ;;  %v2112_v23 = vld [vmem:[%s2680_s7 + $0x18] sm:$0xff] }
 0x439   : > { %1478 = vmatprep.mubr.f32.mxu1 %v2270_v0  ;;  %1708 = vmatprep.mubr.f32.mxu0 %v2270_v0  ;;  %v2119_v24 = vld [vmem:[%s2680_s7 + $0x38] sm:$0xff] }
 0x43a   : > { %1414 = vmatprep.subr.mxu1 %v1249_v6  ;;  %1644 = vmatprep.subr.mxu0 %v1249_v6 }
 0x43b   : > { %1415 = vmatpush1.msra.mxu1 %v1248_v22  ;;  %1645 = vmatpush1.msra.mxu0 %v1248_v22 }
 0x43c   : > { %1724 = vmatprep.subr.mxu1 %v1240_v47 }
 0x440   : > { %2111 = vmatmul.mubr.msk.f32.vlgmr.msra.gmra.mrb[2].mxu1 %vm486_vm0, %v1258_v7  ;;  %2117 = vmatmul.mubr.msk.f32.vlgmr.msra.gmra.mrb[4].mxu0 %vm486_vm0, %v2112_v23 }
 0x441   : > { %1725 = vmatpush1.msra.mxu1 %v1239_v48  ;;  %1788 = vmatprep.mubr.f32.mxu1 %v2270_v0 }
 0x442   : > { %1800 = vmatprep.subr.mxu1 %v1257_v59 }
 0x444   : > { %2120 = vmatmul.mubr.msk.f32.vlgmr.msra.gmra.mrb[4].mxu1 %vm486_vm0, %v2119_v24 }
 0x445   : > { %1801 = vmatpush1.msra.mxu1 %v1256_v58  ;;  %1864 = vmatprep.mubr.f32.mxu1 %v2270_v0 }
 0x446   : > { %1874 = vmatprep.subr.mxu1 %v1249_v6 }
 0x44c   : > { %2122 = vmatmul.mubr.msk.f32.vlgmr.msra.gmra.mrb[4].mxu1 %vm486_vm0, %v2121_v8 }
 0x44d   : > { %1875 = vmatpush1.msra.mxu1 %v1248_v22  ;;  %1938 = vmatprep.mubr.f32.mxu1 %v2270_v0  ;;  %v1950_v0 = vpop.permute.xlu0 %1949 }
 0x454   : > { %2123 = vmatmul.mubr.msk.f32.vlgmr.msra.gmra.mrb[4].mxu1 %vm486_vm0, %v2118_v9 }
 0x513   : > { %v1480_v10 = vpop.f32.mrb[2].mxu1  ;;  %v1710_v11 = vpop.f32.mrb[4].mxu0 }
 0x514   : > { %v1712_v12 = vpop.f32.mrb[5].mxu0  ;;  %1954 = vrot.lane.b32.xlu1 %v1480_v10, %s2274_s30  ;;  %v1482_v13 = vpop.f32.mrb[3].mxu1  ;;  %v1952_v28 = vadd.f32 %v1950_v0, %v1710_v11 }
 0x515   : > { %1956 = vrot.lane.b32.xlu0 %v1482_v13, %s2274_s30  ;;  %v1953_v29 = vadd.f32 %v1950_v0, %v1712_v12  ;;  %s2631_s30 = scalar_lea.hbm %s2684_s11, %s2130_s18 }
 0x527   : > { %v1940_v15 = vpop.f32.mrb[4].mxu1 }
 0x528   : > { %1964 = vrot.lane.b32.xlu1 %v1940_v15, %s2275_s12  ;;  %v1942_v16 = vpop.f32.mrb[5].mxu1 }
 0x529   : > { %1966 = vrot.lane.b32.xlu0 %v1942_v16, %s2275_s12  ;;  %s2206_s12 = scalar_lea.vmem %s2633_s17, 256 }
 0x52a   : > { %p2207_p11 = scmp.ne.s32.totalorder %s2633_s17, %s2206_s12  ;;  %p2214_p1 = scmp.lt.s32.totalorder %s2212_s16, %s2206_s12 }
 0x52c   : > { %p2208_p12 = pnand %p2207_p11, %p2378_p5  ;;  %p2215_p2 = por %p2214_p1, %p2213_p0 }
 0x52e   : > { %p2209_p13 = pneg %p2208_p12 }
 0x530   : > { %p2216_p3 = pnand %p2215_p2, %p2209_p13 }
 0x586   : > { %v1955_v17 = vpop.permute.xlu1 %1954 }
 0x587   : > { %v1957_v18 = vpop.permute.xlu0 %1956 }
 0x588   : > { %v1958_v19 = vsel %vm1184_vm3, %v1955_v17, %v1957_v18  ;;  %v1959_v20 = vsel %vm1184_vm3, %v1957_v18, %v1955_v17 }
 0x589   : > { %v1960_v25 = vmul.f32 %v1959_v20, %v2511_v56  ;;  %v1961_v26 = vmul.f32 %v1958_v19, %v2513_v57  ;;  %v1975_v57 = vld [vmem:[%s2683_s10] sm:$0xff] }
 0x58b   : > { %v1962_v33 = vadd.f32 %v1960_v25, %v1952_v28  ;;  %v1963_v34 = vadd.f32 %v1961_v26, %v1953_v29 }
 0x59a   : > { %v1965_v27 = vpop.permute.xlu1 %1964 }
 0x59b   : > { %v1967_v30 = vpop.permute.xlu0 %1966 }
 0x59c   : > { %v1968_v31 = vsel %vm1195_vm4, %v1965_v27, %v1967_v30  ;;  %v1969_v32 = vsel %vm1195_vm4, %v1967_v30, %v1965_v27 }
 0x59d   : > { %v1970_v35 = vmul.f32 %v1968_v31, %v2524_v4  ;;  %v1971_v36 = vmul.f32 %v1969_v32, %v2526_v5 }
 0x59f   : > { %v1972_v37 = vadd.f32 %v1970_v35, %v1962_v33  ;;  %v1973_v56 = vadd.f32 %v1971_v36, %v1963_v34 }
 0x5a1   : > { %v1976_v38 = vadd.f32 %v1973_v56, %v1972_v37 }
 0x5a3   : > { %1977 = vadd.xlane.f32.xlu1 %v1976_v38 }
 0x5b4   : > { %2000 = vperm.xlu1 %2201, %v1975_v57  }
 0x630   : > { %v1978_v39 = vpop.xlane.xlu1 %1977 }
 0x631   : > { %v1979_v40 = vmul.f32 0.00390625, %v1978_v39 }
 0x633   : > { %v1980_v14 = vsub.f32 %v1972_v37, %v1979_v40  ;;  %v1981_v41 = vsub.f32 %v1973_v56, %v1979_v40 }
 0x634   : > { %v2001_v52 = vpop.permute.xlu1 %2000 }
 0x635   : > { %v1982_v42 = vmul.f32 %v1980_v14, %v1980_v14  ;;  %v1983_v43 = vmul.f32 %v1981_v41, %v1981_v41 }
 0x637   : > { %v1984_v44 = vadd.f32 %v1983_v43, %v1982_v42 }
 0x639   : > { %1985 = vadd.xlane.f32.xlu0 %v1984_v44 }
 0x6c6   : > { %v1986_v4 = vpop.xlane.xlu0 %1985 }
 0x6c7   : > { %v1987_v5 = vmul.f32 0.00390625, %v1986_v4 }
 0x6c9   : > { %v1988_v45 = vadd.f32 1e-05, %v1987_v5 }
 0x6cb   : > { %2204 = vrsqrt.f32 %v1988_v45 }
 0x6d5   : > { %v2205_v47 = vpop.eup %2204 }
 0x6d6   : > { %v1990_v48 = vmul.f32 %v2205_v47, %v1974_v46 }
 0x6d8   : > { %1993 = vperm.xlu0 %2200, %v1990_v48  }
 0x757   : > { %v1994_v49 = vpop.permute.xlu0 %1993 }
 0x758   : > { %v1996_v50 = vmul.f32 %v1994_v49, %v1980_v14  ;;  %v1997_v51 = vmul.f32 %v1994_v49, %v1981_v41 }
 0x75a   : > { %v2003_v53 = vadd.f32 %v2001_v52, %v1996_v50  ;;  %v2004_v54 = vadd.f32 %v2001_v52, %v1997_v51 }
 0x75c   : > { %v2005_v55 = vadd.f32 %v2003_v53, %v2395_v1  ;;  %v2006_v58 = vadd.f32 %v2004_v54, %v2404_v3 }
 0x75e   : > { %2007 = vst [vmem:[%s380_s23] sm:$0xff] %v2005_v55  ;;  %2008 = vst [vmem:[%s380_s23 + $0x8] sm:$0xff] %v2006_v58 }
 0x75f   : > { %2219 = shalt.err (!%p2216_p3)
}
 0x760   : > { %s2220_s15 = scalar_lea.hbm %s2631_s30, 256  ;;  %s2224_s25 = scalar_lea.hbm %s2684_s11, 512 }
 0x761   : > { %p2221_p4 = scmp.ne.s32.totalorder %s2631_s30, %s2220_s15  ;;  %p2225_p9 = scmp.lt.u32.totalorder %s2631_s30, %s2684_s11 }
 0x762   : > { %p2226_p10 = scmp.lt.u32.totalorder %s2224_s25, %s2220_s15  ;;  %p2228_p12 = scmp.lt.u32.totalorder %s2220_s15, %s2631_s30 }
 0x763   : > { %p2222_p7 = pnand %p2221_p4, %p2378_p5 }
 0x764   : > { %p2227_p11 = por %p2226_p10, %p2225_p9 }
 0x765   : > { %p2223_p8 = pneg %p2222_p7 }
 0x766   : > { %p2229_p13 = por %p2228_p12, %p2227_p11 }
 0x768   : > { %p2230_p0 = pnand %p2229_p13, %p2223_p8 }
 0x76a   : > { %2233 = shalt.err (!%p2230_p0)
}
 0x76b   : > { %2155 = dma.vmem_to_hbm [thread:$0]  (%p2378_p5), %s2633_s17, 256, %s2631_s30, %s2010_s6  }
 0x76c PF: > { %p2161_p1 = scmp.ge.s32.totalorder %s2268_s22, 2  ;;  %s2036_s12 = sand.u32 1, %s2256_s19  }
 0x76d   : > { %s2037_s14 = scalar_lea.sflag [#allocation4], %s2036_s12 }
 0x76e   : > { %p2158_p2 = pnand %p2161_p1, %p2382_p6 }
 0x770   : > { %2251 = dma.done.wait (!%p2158_p2), %s2037_s14, 256  }
 0x771   : > { %2253 = vsyncadd (!%p2158_p2), %s2037_s14, 4294967040  ;;  %p22_p3 = scmp.ge.s32.totalorder %s2365_s24, 4   ;;  %s2687_s19 = smov %s2260_s20 }
 0x772   : > { %s2688_s20 = smov %s2264_s21  ;;  %s2689_s21 = smov %s2376_s27 }
 0x773   : > { %s2690_s22 = smov %s2365_s24  ;;  %24 = sbr.rel (!%p22_p3) target bundleno = 5 (0x5), region = 115 }
 0x77a   :  { %2042 = vsyncpa [#allocation4], 1 }
 0x77b   :  { %2044 = vsyncpa [#allocation4 + $0x1], 1 }

</bundles_post_ra>
